<compile_context>
chip_gen: v7x
topology: tpu7x:2x2x1
jax: 0.10.0
libtpu: 0.0.40
codegen_flags: <defaults>
</compile_context>

<pallas_src>
import jax
import jax.numpy as jnp
from jax.experimental import pallas as pl
from jax.experimental.pallas import tpu as pltpu

HIDDEN = 256
BN_EPS = 1e-5


def _fc4_group_kernel(x_ref, w1_ref, bvec_ref, w2_ref, w3_ref, w4_ref, o_ref):
    """One grid step == G source-specific FC_4 heads (eval BN folded into w1/b1)."""
    x = x_ref[...]                                   # (B, D) bf16, shared by all sources
    G = w1_ref.shape[0]
    outs = []
    for j in range(G):                               # static, fully unrolled
        bv = bvec_ref[j]                             # (3, 256) f32 rows: b1', b2, b3

        # Linear(D -> 256) [BN folded in] + ReLU   (Dropout in eval == identity)
        h = jnp.dot(x, w1_ref[j], preferred_element_type=jnp.float32) + bv[0:1, :]
        h = jnp.maximum(h, 0.0)

        # Linear(256 -> 256) + ReLU
        h = jnp.dot(h.astype(jnp.bfloat16), w2_ref[j],
                    preferred_element_type=jnp.float32) + bv[1:2, :]
        h = jnp.maximum(h, 0.0)

        # Linear(256 -> 256) + ReLU
        h = jnp.dot(h.astype(jnp.bfloat16), w3_ref[j],
                    preferred_element_type=jnp.float32) + bv[2:3, :]
        h = jnp.maximum(h, 0.0)

        # Linear(256 -> out_size), no bias
        outs.append(jnp.dot(h.astype(jnp.bfloat16), w4_ref[j],
                            preferred_element_type=jnp.float32))

    # Single lane-contiguous store / writeback per grid step: (B, G*out_size).
    o_ref[0] = outs[0] if G == 1 else jnp.concatenate(outs, axis=-1)


def _choose_group(nsound, d, out_size, max_group=8, weight_budget_bytes=12 << 20):
    """Pick #sources per grid step: amortize per-step pipeline overhead, bound the
    double-buffered per-step weight footprint, and prefer an even number of grid
    steps so both v7x TensorCores get work (no-op on single-TC v5e/v6e)."""
    per_src = 2 * 2 * (d * HIDDEN + 2 * HIDDEN * HIDDEN
                       + HIDDEN * max(out_size, 128))          # double-buffered bf16
    cap = int(max(1, min(max_group, weight_budget_bytes // max(per_src, 1))))
    divisors = [g for g in range(1, min(nsound, cap) + 1) if nsound % g == 0]
    even_steps = [g for g in divisors if (nsound // g) % 2 == 0]
    return max(even_steps) if even_steps else max(divisors)


def decoder_src_reg(enc_out, params):
    """enc_out: any shape (B, ...) -> flattened to (B, D). Returns (B, out*Nsound)."""
    B = enc_out.shape[0]
    # flatten + straight-to-bf16 (no intermediate f32 copy; BN fold only touches weights)
    xb = enc_out.reshape(B, -1).astype(jnp.bfloat16)
    D = xb.shape[1]

    w1, b1, gamma, beta, mean, var, w2, b2, w3, b3, w4 = params
    nsound = w1.shape[0]
    out_size = w4.shape[-1]

    # ---- Fold eval-mode BatchNorm into the first Linear (done in f32). ----
    scale = gamma * jax.lax.rsqrt(var + BN_EPS)         # (N, 1, H)
    w1f = w1 * scale                                    # (N, D, H)
    b1f = (b1 - mean) * scale + beta                    # (N, 1, H)

    # Pack the three per-source 256-wide vectors into one block: (N, 3, H) f32.
    bvec = jnp.concatenate([b1f, b2, b3], axis=1)

    # bf16 operands for the MXU; accumulation stays f32 inside the kernel.
    w1b = w1f.astype(jnp.bfloat16)
    w2b = w2.astype(jnp.bfloat16)
    w3b = w3.astype(jnp.bfloat16)
    w4b = w4.astype(jnp.bfloat16)

    # ---- Source grouping: G heads per grid step. ----
    G = _choose_group(nsound, D, out_size)
    n_groups = nsound // G

    # Double-buffered VMEM footprint (bytes), with lane/sublane padding.
    # x has a constant index_map -> single-buffered.
    def _pad(n, m):
        return ((n + m - 1) // m) * m
    BF16, F32 = 2, 4
    footprint = (
        _pad(B, 16) * _pad(D, 128) * BF16                      # x (single-buffered)
        + 2 * G * _pad(D, 16) * HIDDEN * BF16                  # w1' (BN folded)
        + 2 * G * _pad(3, 8) * HIDDEN * F32                    # packed bias vectors
        + 2 * 2 * G * HIDDEN * HIDDEN * BF16                   # w2, w3
        + 2 * G * HIDDEN * _pad(out_size, 128) * BF16          # w4
        + 2 * _pad(B, 8) * _pad(G * out_size, 128) * F32       # output block
    )
    try:
        vmem_cap = pltpu.get_tpu_info().vmem_capacity_bytes    # 64 MiB on v7x, 128 on v5e/v6e
    except Exception:
        vmem_cap = 128 << 20
    vmem_limit = int(min(int(0.75 * vmem_cap), max(16 << 20, 2 * footprint)))

    out = pl.pallas_call(
        _fc4_group_kernel,
        out_shape=jax.ShapeDtypeStruct((n_groups, B, G * out_size), jnp.float32),
        grid_spec=pltpu.PrefetchScalarGridSpec(
            num_scalar_prefetch=0,
            grid=(n_groups,),
            in_specs=[
                pl.BlockSpec((B, D), lambda g: (0, 0)),                      # x (shared)
                pl.BlockSpec((G, D, HIDDEN), lambda g: (g, 0, 0)),           # w1' (BN folded)
                pl.BlockSpec((G, 3, HIDDEN), lambda g: (g, 0, 0)),           # b1'/b2/b3 packed
                pl.BlockSpec((G, HIDDEN, HIDDEN), lambda g: (g, 0, 0)),      # w2
                pl.BlockSpec((G, HIDDEN, HIDDEN), lambda g: (g, 0, 0)),      # w3
                pl.BlockSpec((G, HIDDEN, out_size), lambda g: (g, 0, 0)),    # w4
            ],
            out_specs=pl.BlockSpec((1, B, G * out_size), lambda g: (g, 0, 0)),
        ),
        compiler_params=pltpu.CompilerParams(
            dimension_semantics=("parallel",),
            vmem_limit_bytes=vmem_limit,
        ),
    )(xb, w1b, bvec, w2b, w3b, w4b)

    # torch.cat(out, dim=-1): (n_groups, B, G*out) -> (B, Nsound*out)
    # (source s = g*G + j occupies columns j*out:(j+1)*out of group g's block,
    #  so group-major/source-minor ordering matches the global concat order).
    return jnp.transpose(out, (1, 0, 2)).reshape(B, nsound * out_size)


def init_params(key, enc_out_size, nsound, out_size=2):
    """Deterministic synthetic parameters, stacked over the Nsound axis."""
    ks = jax.random.split(key, 8)

    def u(k, shape, scale):
        return jax.random.uniform(k, shape, jnp.float32, -1.0, 1.0) * scale

    w1 = u(ks[0], (nsound, enc_out_size, HIDDEN), 1.0 / jnp.sqrt(enc_out_size))
    b1 = u(ks[1], (nsound, 1, HIDDEN), 1.0 / jnp.sqrt(enc_out_size))
    gamma = jnp.ones((nsound, 1, HIDDEN), jnp.float32)
    beta = jnp.zeros((nsound, 1, HIDDEN), jnp.float32)
    mean = u(ks[2], (nsound, 1, HIDDEN), 0.1)
    var = jnp.abs(u(ks[3], (nsound, 1, HIDDEN), 0.1)) + 1.0
    w2 = u(ks[4], (nsound, HIDDEN, HIDDEN), 1.0 / jnp.sqrt(HIDDEN))
    b2 = u(ks[5], (nsound, 1, HIDDEN), 1.0 / jnp.sqrt(HIDDEN))
    w3 = u(ks[6], (nsound, HIDDEN, HIDDEN), 1.0 / jnp.sqrt(HIDDEN))
    b3 = u(ks[7], (nsound, 1, HIDDEN), 1.0 / jnp.sqrt(HIDDEN))
    w4 = u(jax.random.fold_in(key, 99), (nsound, HIDDEN, out_size),
           1.0 / jnp.sqrt(HIDDEN))
    return (w1, b1, gamma, beta, mean, var, w2, b2, w3, b3, w4)


def _reference_bf16(enc_out, params):
    """Pure-JAX reference using the same BN fold + bf16-matmul quantization."""
    B = enc_out.shape[0]
    x = enc_out.reshape(B, -1).astype(jnp.float32)
    w1, b1, gamma, beta, mean, var, w2, b2, w3, b3, w4 = params
    scale = gamma * jax.lax.rsqrt(var + BN_EPS)
    w1f = w1 * scale
    b1f = (b1 - mean) * scale + beta
    bf = jnp.bfloat16
    outs = []
    for s in range(w1.shape[0]):
        h = jnp.dot(x.astype(bf), w1f[s].astype(bf),
                    preferred_element_type=jnp.float32) + b1f[s, 0]
        h = jnp.maximum(h, 0.0)
        h = jnp.maximum(jnp.dot(h.astype(bf), w2[s].astype(bf),
                                preferred_element_type=jnp.float32) + b2[s, 0], 0.0)
        h = jnp.maximum(jnp.dot(h.astype(bf), w3[s].astype(bf),
                                preferred_element_type=jnp.float32) + b3[s, 0], 0.0)
        outs.append(jnp.dot(h.astype(bf), w4[s].astype(bf),
                            preferred_element_type=jnp.float32))
    return jnp.concatenate(outs, axis=-1)


def _reference_f32(enc_out, params):
    """Unquantized f32 reference matching the PyTorch eval-mode forward exactly."""
    B = enc_out.shape[0]
    x = enc_out.reshape(B, -1).astype(jnp.float32)
    w1, b1, gamma, beta, mean, var, w2, b2, w3, b3, w4 = params
    outs = []
    for s in range(w1.shape[0]):
        z = x @ w1[s] + b1[s, 0]
        z = (z - mean[s, 0]) * jax.lax.rsqrt(var[s, 0] + BN_EPS) * gamma[s, 0] + beta[s, 0]
        h = jnp.maximum(z, 0.0)
        h = jnp.maximum(h @ w2[s] + b2[s, 0], 0.0)
        h = jnp.maximum(h @ w3[s] + b3[s, 0], 0.0)
        outs.append(h @ w4[s])
    return jnp.concatenate(outs, axis=-1)


if __name__ == "__main__":
    key = jax.random.PRNGKey(0)
    k_in, k_par = jax.random.split(key)

    # enc_out: (B=2, 4, 8) -> flatten -> (2, 32); Nsound=4; spherical -> out_size=2.
    # With these shapes _choose_group picks G=2 -> grid=(2,), exercising both the
    # source-grouping path and an even (v7x-friendly) grid.
    B, nsound, out_size = 2, 4, 2
    enc_out = jax.random.normal(k_in, (B, 4, 8), jnp.float32)
    enc_out_size = 4 * 8

    params = init_params(k_par, enc_out_size, nsound, out_size)

    out = jax.jit(decoder_src_reg)(enc_out, params)
    out = jax.block_until_ready(out)

    assert out.shape == (B, nsound * out_size), out.shape

    # Exact check vs a reference that applies the identical BN fold + bf16 quantization.
    ref_q = _reference_bf16(enc_out, params)
    assert jnp.allclose(out, ref_q, atol=1e-2, rtol=1e-2), (
        float(jnp.max(jnp.abs(out - ref_q))))

    # Accuracy check vs the unquantized f32 PyTorch-equivalent forward.
    ref_f = _reference_f32(enc_out, params)
    assert jnp.allclose(out, ref_f, atol=5e-2, rtol=5e-2), (
        float(jnp.max(jnp.abs(out - ref_f))))

    print("KERNEL_OK")
</pallas_src>

<mosaic_0001>
module attributes {stable_mosaic.version = 11 : i64} {
  func.func @_fc4_group_kernel(%arg0: i32, %arg1: memref<2x32xbf16, #tpu.memory_space<vmem>>, %arg2: memref<2x32x256xbf16, #tpu.memory_space<vmem>>, %arg3: memref<2x3x256xf32, #tpu.memory_space<vmem>>, %arg4: memref<2x256x256xbf16, #tpu.memory_space<vmem>>, %arg5: memref<2x256x256xbf16, #tpu.memory_space<vmem>>, %arg6: memref<2x256x2xbf16, #tpu.memory_space<vmem>>, %arg7: memref<1x2x4xf32, #tpu.memory_space<vmem>>) attributes {dimension_semantics = [#tpu.dimension_semantics<parallel>], iteration_bounds = array<i64: 2>, scalar_prefetch = 0 : i64, scratch_operands = 0 : i64, tpu.core_type = #tpu.core_type<tc>, window_params = [{pipeline_mode = #tpu.pipeline_mode<synchronous>, transform_indices = @transform_0, window_bounds = array<i64: 2, 32>}, {transform_indices = @transform_1, window_bounds = array<i64: 2, 32, 256>}, {transform_indices = @transform_2, window_bounds = array<i64: 2, 3, 256>}, {transform_indices = @transform_3, window_bounds = array<i64: 2, 256, 256>}, {transform_indices = @transform_4, window_bounds = array<i64: 2, 256, 256>}, {transform_indices = @transform_5, window_bounds = array<i64: 2, 256, 2>}, {transform_indices = @transform_6, window_bounds = array<i64: 1, 2, 4>}]} {
    %c0 = arith.constant 0 : index
    %c0_0 = arith.constant 0 : index
    %0 = vector.load %arg1[%c0, %c0_0] : memref<2x32xbf16, #tpu.memory_space<vmem>>, vector<2x32xbf16>
    %c0_1 = arith.constant 0 : index
    %c0_2 = arith.constant 0 : index
    %c0_3 = arith.constant 0 : index
    %1 = vector.load %arg3[%c0_1, %c0_2, %c0_3] : memref<2x3x256xf32, #tpu.memory_space<vmem>>, vector<1x3x256xf32>
    %2 = vector.shape_cast %1 : vector<1x3x256xf32> to vector<3x256xf32>
    %c0_4 = arith.constant 0 : index
    %c0_5 = arith.constant 0 : index
    %c0_6 = arith.constant 0 : index
    %3 = vector.load %arg2[%c0_4, %c0_5, %c0_6] : memref<2x32x256xbf16, #tpu.memory_space<vmem>>, vector<1x32x256xbf16>
    %4 = vector.shape_cast %3 : vector<1x32x256xbf16> to vector<32x256xbf16>
    %cst = arith.constant dense<0.000000e+00> : vector<2x256xf32>
    %5 = tpu.matmul %0, %4, %cst {dimension_numbers = #tpu.dot_dimension_numbers<[1], [0], [0], [1], [0, 0, 1, 1], [], []>} : vector<2x32xbf16>, vector<32x256xbf16>, vector<2x256xf32> -> vector<2x256xf32>
    %6 = vector.extract_strided_slice %2 {offsets = [0, 0], sizes = [1, 256], strides = [1, 1]} : vector<3x256xf32> to vector<1x256xf32>
    %7 = vector.broadcast %6 : vector<1x256xf32> to vector<2x256xf32>
    %8 = arith.addf %5, %7 : vector<2x256xf32>
    %cst_7 = arith.constant 0.000000e+00 : f32
    %9 = vector.broadcast %cst_7 : f32 to vector<2x256xf32>
    %10 = arith.maximumf %8, %9 : vector<2x256xf32>
    %11 = arith.truncf %10 : vector<2x256xf32> to vector<2x256xbf16>
    %c0_8 = arith.constant 0 : index
    %c0_9 = arith.constant 0 : index
    %c0_10 = arith.constant 0 : index
    %12 = vector.load %arg4[%c0_8, %c0_9, %c0_10] : memref<2x256x256xbf16, #tpu.memory_space<vmem>>, vector<1x256x256xbf16>
    %13 = vector.shape_cast %12 : vector<1x256x256xbf16> to vector<256x256xbf16>
    %cst_11 = arith.constant dense<0.000000e+00> : vector<2x256xf32>
    %14 = tpu.matmul %11, %13, %cst_11 {dimension_numbers = #tpu.dot_dimension_numbers<[1], [0], [0], [1], [0, 0, 1, 1], [], []>} : vector<2x256xbf16>, vector<256x256xbf16>, vector<2x256xf32> -> vector<2x256xf32>
    %15 = vector.extract_strided_slice %2 {offsets = [1, 0], sizes = [1, 256], strides = [1, 1]} : vector<3x256xf32> to vector<1x256xf32>
    %16 = vector.broadcast %15 : vector<1x256xf32> to vector<2x256xf32>
    %17 = arith.addf %14, %16 : vector<2x256xf32>
    %cst_12 = arith.constant 0.000000e+00 : f32
    %18 = vector.broadcast %cst_12 : f32 to vector<2x256xf32>
    %19 = arith.maximumf %17, %18 : vector<2x256xf32>
    %20 = arith.truncf %19 : vector<2x256xf32> to vector<2x256xbf16>
    %c0_13 = arith.constant 0 : index
    %c0_14 = arith.constant 0 : index
    %c0_15 = arith.constant 0 : index
    %21 = vector.load %arg5[%c0_13, %c0_14, %c0_15] : memref<2x256x256xbf16, #tpu.memory_space<vmem>>, vector<1x256x256xbf16>
    %22 = vector.shape_cast %21 : vector<1x256x256xbf16> to vector<256x256xbf16>
    %cst_16 = arith.constant dense<0.000000e+00> : vector<2x256xf32>
    %23 = tpu.matmul %20, %22, %cst_16 {dimension_numbers = #tpu.dot_dimension_numbers<[1], [0], [0], [1], [0, 0, 1, 1], [], []>} : vector<2x256xbf16>, vector<256x256xbf16>, vector<2x256xf32> -> vector<2x256xf32>
    %24 = vector.extract_strided_slice %2 {offsets = [2, 0], sizes = [1, 256], strides = [1, 1]} : vector<3x256xf32> to vector<1x256xf32>
    %25 = vector.broadcast %24 : vector<1x256xf32> to vector<2x256xf32>
    %26 = arith.addf %23, %25 : vector<2x256xf32>
    %cst_17 = arith.constant 0.000000e+00 : f32
    %27 = vector.broadcast %cst_17 : f32 to vector<2x256xf32>
    %28 = arith.maximumf %26, %27 : vector<2x256xf32>
    %29 = arith.truncf %28 : vector<2x256xf32> to vector<2x256xbf16>
    %c0_18 = arith.constant 0 : index
    %c0_19 = arith.constant 0 : index
    %c0_20 = arith.constant 0 : index
    %30 = vector.load %arg6[%c0_18, %c0_19, %c0_20] : memref<2x256x2xbf16, #tpu.memory_space<vmem>>, vector<1x256x2xbf16>
    %31 = vector.shape_cast %30 : vector<1x256x2xbf16> to vector<256x2xbf16>
    %cst_21 = arith.constant dense<0.000000e+00> : vector<2x2xf32>
    %32 = tpu.matmul %29, %31, %cst_21 {dimension_numbers = #tpu.dot_dimension_numbers<[1], [0], [0], [1], [0, 0, 1, 1], [], []>} : vector<2x256xbf16>, vector<256x2xbf16>, vector<2x2xf32> -> vector<2x2xf32>
    %c1 = arith.constant 1 : index
    %c0_22 = arith.constant 0 : index
    %c0_23 = arith.constant 0 : index
    %33 = vector.load %arg3[%c1, %c0_22, %c0_23] : memref<2x3x256xf32, #tpu.memory_space<vmem>>, vector<1x3x256xf32>
    %34 = vector.shape_cast %33 : vector<1x3x256xf32> to vector<3x256xf32>
    %c1_24 = arith.constant 1 : index
    %c0_25 = arith.constant 0 : index
    %c0_26 = arith.constant 0 : index
    %35 = vector.load %arg2[%c1_24, %c0_25, %c0_26] : memref<2x32x256xbf16, #tpu.memory_space<vmem>>, vector<1x32x256xbf16>
    %36 = vector.shape_cast %35 : vector<1x32x256xbf16> to vector<32x256xbf16>
    %cst_27 = arith.constant dense<0.000000e+00> : vector<2x256xf32>
    %37 = tpu.matmul %0, %36, %cst_27 {dimension_numbers = #tpu.dot_dimension_numbers<[1], [0], [0], [1], [0, 0, 1, 1], [], []>} : vector<2x32xbf16>, vector<32x256xbf16>, vector<2x256xf32> -> vector<2x256xf32>
    %38 = vector.extract_strided_slice %34 {offsets = [0, 0], sizes = [1, 256], strides = [1, 1]} : vector<3x256xf32> to vector<1x256xf32>
    %39 = vector.broadcast %38 : vector<1x256xf32> to vector<2x256xf32>
    %40 = arith.addf %37, %39 : vector<2x256xf32>
    %cst_28 = arith.constant 0.000000e+00 : f32
    %41 = vector.broadcast %cst_28 : f32 to vector<2x256xf32>
    %42 = arith.maximumf %40, %41 : vector<2x256xf32>
    %43 = arith.truncf %42 : vector<2x256xf32> to vector<2x256xbf16>
    %c1_29 = arith.constant 1 : index
    %c0_30 = arith.constant 0 : index
    %c0_31 = arith.constant 0 : index
    %44 = vector.load %arg4[%c1_29, %c0_30, %c0_31] : memref<2x256x256xbf16, #tpu.memory_space<vmem>>, vector<1x256x256xbf16>
    %45 = vector.shape_cast %44 : vector<1x256x256xbf16> to vector<256x256xbf16>
    %cst_32 = arith.constant dense<0.000000e+00> : vector<2x256xf32>
    %46 = tpu.matmul %43, %45, %cst_32 {dimension_numbers = #tpu.dot_dimension_numbers<[1], [0], [0], [1], [0, 0, 1, 1], [], []>} : vector<2x256xbf16>, vector<256x256xbf16>, vector<2x256xf32> -> vector<2x256xf32>
    %47 = vector.extract_strided_slice %34 {offsets = [1, 0], sizes = [1, 256], strides = [1, 1]} : vector<3x256xf32> to vector<1x256xf32>
    %48 = vector.broadcast %47 : vector<1x256xf32> to vector<2x256xf32>
    %49 = arith.addf %46, %48 : vector<2x256xf32>
    %cst_33 = arith.constant 0.000000e+00 : f32
    %50 = vector.broadcast %cst_33 : f32 to vector<2x256xf32>
    %51 = arith.maximumf %49, %50 : vector<2x256xf32>
    %52 = arith.truncf %51 : vector<2x256xf32> to vector<2x256xbf16>
    %c1_34 = arith.constant 1 : index
    %c0_35 = arith.constant 0 : index
    %c0_36 = arith.constant 0 : index
    %53 = vector.load %arg5[%c1_34, %c0_35, %c0_36] : memref<2x256x256xbf16, #tpu.memory_space<vmem>>, vector<1x256x256xbf16>
    %54 = vector.shape_cast %53 : vector<1x256x256xbf16> to vector<256x256xbf16>
    %cst_37 = arith.constant dense<0.000000e+00> : vector<2x256xf32>
    %55 = tpu.matmul %52, %54, %cst_37 {dimension_numbers = #tpu.dot_dimension_numbers<[1], [0], [0], [1], [0, 0, 1, 1], [], []>} : vector<2x256xbf16>, vector<256x256xbf16>, vector<2x256xf32> -> vector<2x256xf32>
    %56 = vector.extract_strided_slice %34 {offsets = [2, 0], sizes = [1, 256], strides = [1, 1]} : vector<3x256xf32> to vector<1x256xf32>
    %57 = vector.broadcast %56 : vector<1x256xf32> to vector<2x256xf32>
    %58 = arith.addf %55, %57 : vector<2x256xf32>
    %cst_38 = arith.constant 0.000000e+00 : f32
    %59 = vector.broadcast %cst_38 : f32 to vector<2x256xf32>
    %60 = arith.maximumf %58, %59 : vector<2x256xf32>
    %61 = arith.truncf %60 : vector<2x256xf32> to vector<2x256xbf16>
    %c1_39 = arith.constant 1 : index
    %c0_40 = arith.constant 0 : index
    %c0_41 = arith.constant 0 : index
    %62 = vector.load %arg6[%c1_39, %c0_40, %c0_41] : memref<2x256x2xbf16, #tpu.memory_space<vmem>>, vector<1x256x2xbf16>
    %63 = vector.shape_cast %62 : vector<1x256x2xbf16> to vector<256x2xbf16>
    %cst_42 = arith.constant dense<0.000000e+00> : vector<2x2xf32>
    %64 = tpu.matmul %61, %63, %cst_42 {dimension_numbers = #tpu.dot_dimension_numbers<[1], [0], [0], [1], [0, 0, 1, 1], [], []>} : vector<2x256xbf16>, vector<256x2xbf16>, vector<2x2xf32> -> vector<2x2xf32>
    %65 = tpu.concatenate %32, %64 in 1 : vector<2x2xf32>, vector<2x2xf32> -> vector<2x4xf32>
    %c0_43 = arith.constant 0 : index
    %c0_44 = arith.constant 0 : index
    %c0_45 = arith.constant 0 : index
    %66 = vector.load %arg7[%c0_43, %c0_44, %c0_45] : memref<1x2x4xf32, #tpu.memory_space<vmem>>, vector<1x2x4xf32>
    %67 = vector.shape_cast %66 : vector<1x2x4xf32> to vector<2x4xf32>
    %68 = vector.shape_cast %65 : vector<2x4xf32> to vector<1x2x4xf32>
    tpu.vector_store %arg7[%c0_43, %c0_44, %c0_45], %68 {strides = array<i32>} : memref<1x2x4xf32, #tpu.memory_space<vmem>>, vector<1x2x4xf32>,
    return
  }
  func.func @transform_0(%arg0: i32) -> (i32, i32) {
    %c0_i32 = arith.constant 0 : i32
    %c0_i32_0 = arith.constant 0 : i32
    %c0_i32_1 = arith.constant 0 : i32
    return %c0_i32, %c0_i32_0 : i32, i32
  }
  func.func @transform_1(%arg0: i32) -> (i32, i32, i32) {
    %c0_i32 = arith.constant 0 : i32
    %c0_i32_0 = arith.constant 0 : i32
    %c0_i32_1 = arith.constant 0 : i32
    return %arg0, %c0_i32, %c0_i32_0 : i32, i32, i32
  }
  func.func @transform_2(%arg0: i32) -> (i32, i32, i32) {
    %c0_i32 = arith.constant 0 : i32
    %c0_i32_0 = arith.constant 0 : i32
    %c0_i32_1 = arith.constant 0 : i32
    return %arg0, %c0_i32, %c0_i32_0 : i32, i32, i32
  }
  func.func @transform_3(%arg0: i32) -> (i32, i32, i32) {
    %c0_i32 = arith.constant 0 : i32
    %c0_i32_0 = arith.constant 0 : i32
    %c0_i32_1 = arith.constant 0 : i32
    return %arg0, %c0_i32, %c0_i32_0 : i32, i32, i32
  }
  func.func @transform_4(%arg0: i32) -> (i32, i32, i32) {
    %c0_i32 = arith.constant 0 : i32
    %c0_i32_0 = arith.constant 0 : i32
    %c0_i32_1 = arith.constant 0 : i32
    return %arg0, %c0_i32, %c0_i32_0 : i32, i32, i32
  }
  func.func @transform_5(%arg0: i32) -> (i32, i32, i32) {
    %c0_i32 = arith.constant 0 : i32
    %c0_i32_0 = arith.constant 0 : i32
    %c0_i32_1 = arith.constant 0 : i32
    return %arg0, %c0_i32, %c0_i32_0 : i32, i32, i32
  }
  func.func @transform_6(%arg0: i32) -> (i32, i32, i32) {
    %c0_i32 = arith.constant 0 : i32
    %c0_i32_0 = arith.constant 0 : i32
    %c0_i32_1 = arith.constant 0 : i32
    return %arg0, %c0_i32, %c0_i32_0 : i32, i32, i32
  }
}

</mosaic_0001>

<bundles_post_ra>
// kernel: decoder_src_reg.1
= control target key start
LH: loop header
LB: loop body
LE: loop exit
PB: predicated region body
PF: predicated region fallthrough
CT: control target
= control target key end

     0   :  { %s2643_s21 = smov 0   ;;  %s2938_s0 = inlined_call_operand.vmem [shape: bf16[2,32], index: 0, kind: input, shape index: {}]   ;;  %s2939_s1 = inlined_call_operand.vmem [shape: bf16[4,32,256], index: 1, kind: input, shape index: {}]   ;;  %s2940_s2 = inlined_call_operand.vmem [shape: f32[4,3,256], index: 2, kind: input, shape index: {}]   ;;  %s2941_s3 = inlined_call_operand.vmem [shape: bf16[4,256,256], index: 3, kind: input, shape index: {}]   ;;  %s2942_s4 = inlined_call_operand.vmem [shape: bf16[4,256,256], index: 4, kind: input, shape index: {}]   ;;  %s2943_s5 = inlined_call_operand.vmem [shape: bf16[4,256,2], index: 5, kind: input, shape index: {}]   ;;  %s2944_s6 = inlined_call_operand.vmem [shape: f32[2,2,4], index: 6, kind: output, shape index: {}]  }
   0x1 LB: > { %s2649_s22 = sadd.s32 4294967295, %s2604_s21   ;;  %p2013_p0 = scmp.ge.s32.totalorder %s2604_s21, 1  ;;  %s2604_s21 = sphi %s2643_s21, %s16_s21  }
   0x2   : > { %p262_p1 = scmp.lt.s32.totalorder %s2604_s21, 3 }
   0x4   : > { %p263_p2 = pnand %p2013_p0, %p262_p1 }
   0x5   : > { %s2014_s23 = sshll.u32 (!%p263_p2), %s2649_s22, 1  ;;  %v2606_v0 = vmov (!%p263_p2), 0   ;;  %v2679_v6 = vld [vmem:[%s2938_s0] sm:$0x1] (!%p263_p2)  ;;  %vm401_vm0 = vcmask (!%p263_p2), 261120   ;;  %p351_p4 = scmp.lt.s32.totalorder (!%p263_p2), %s2649_s22, 1 }
   0x6   : > { %266 = sbr.rel (%p263_p2) target bundleno = 1465 (0x5b9), region = 44  ;;  %p317_p3 = scmp.lt.s32.totalorder (!%p263_p2), %s2014_s23, 3  ;;  %437 = vmatprep.mubr.bf16.mxu1 (!%p263_p2), %v2606_v0  ;;  %vm1904_vm1 = vcmask (!%p263_p2), 15360   ;;  %vm1906_vm2 = vcmask (!%p263_p2), 25600  }
   0xd   : > { %s2946_s23 = smov (!%p317_p3, %s2014_s23), 3  ;;  %s2948_s22 = smov (!%p351_p4, %s2649_s22), 1 }
   0xe   : > { %s2303_s24 = sshll.u32 %s2946_s23, 5  ;;  %s2305_s25 = sshll.u32 %s2946_s23, 8 }
   0xf   : > { %s2662_s28 = scalar_lea.vmem %s2939_s1, %s2303_s24  ;;  %s2670_s7 = scalar_lea.vmem %s2941_s3, %s2305_s25 }
  0x10   : > { %v2362_v1 = vld [vmem:[%s2662_s28 + $0x4] ss:$8 sps:$4 sm:$0xff]   ;;  %v2364_v2 = vld [vmem:[%s2662_s28] ss:$8 sps:$4 sm:$0xff]   ;;  %v2365_v3 = vld [vmem:[%s2662_s28 + $0x14] ss:$8 sps:$4 sm:$0xff]   ;;  %s2697_s12 = scalar_lea.vmem %s2942_s4, %s2305_s25 }
  0x11   : > { %405 = vmatprep.subr.bf16.mxu1 %v2362_v1  ;;  %v2367_v4 = vld [vmem:[%s2662_s28 + $0x10] ss:$8 sps:$4 sm:$0xff]   ;;  %v2370_v5 = vld [vmem:[%s2670_s7 + $0x4] ss:$8 sps:$4 sm:$0xff]   ;;  %v2368_v7 = vld [vmem:[%s2670_s7] ss:$8 sps:$4 sm:$0xff]  }
  0x12   : > { %406 = vmatpush1.bf16.msra.mxu1 %v2364_v2  ;;  %v2373_v8 = vld [vmem:[%s2670_s7 + $0x14] ss:$8 sps:$4 sm:$0xff]   ;;  %v2371_v9 = vld [vmem:[%s2670_s7 + $0x10] ss:$8 sps:$4 sm:$0xff]   ;;  %v2376_v10 = vld [vmem:[%s2670_s7 + $0x24] ss:$8 sps:$4 sm:$0xff]  }
  0x13   : > { %407 = vmatprep.subr.bf16.mxu1 %v2365_v3  ;;  %v2374_v11 = vld [vmem:[%s2670_s7 + $0x20] ss:$8 sps:$4 sm:$0xff]   ;;  %v2379_v12 = vld [vmem:[%s2670_s7 + $0x34] ss:$8 sps:$4 sm:$0xff]   ;;  %v2377_v13 = vld [vmem:[%s2670_s7 + $0x30] ss:$8 sps:$4 sm:$0xff]   ;;  %v363_v3 = vlaneseq }
  0x14   : > { %v2382_v14 = vld [vmem:[%s2670_s7 + $0x44] ss:$8 sps:$4 sm:$0xff]   ;;  %v2380_v15 = vld [vmem:[%s2670_s7 + $0x40] ss:$8 sps:$4 sm:$0xff]   ;;  %v2385_v16 = vld [vmem:[%s2670_s7 + $0x54] ss:$8 sps:$4 sm:$0xff]  }
  0x15   : > { %v2383_v17 = vld [vmem:[%s2670_s7 + $0x50] ss:$8 sps:$4 sm:$0xff]   ;;  %v2388_v18 = vld [vmem:[%s2670_s7 + $0x64] ss:$8 sps:$4 sm:$0xff]   ;;  %v2386_v19 = vld [vmem:[%s2670_s7 + $0x60] ss:$8 sps:$4 sm:$0xff]  }
  0x16   : > { %408 = vmatpush1.bf16.msra.mxu1 %v2367_v4  ;;  %v2391_v20 = vld [vmem:[%s2670_s7 + $0x74] ss:$8 sps:$4 sm:$0xff]   ;;  %v2389_v21 = vld [vmem:[%s2670_s7 + $0x70] ss:$8 sps:$4 sm:$0xff]   ;;  %v2394_v22 = vld [vmem:[%s2670_s7 + $0x84] ss:$8 sps:$4 sm:$0xff]  }
  0x17   : > { %660 = vmatprep.subr.bf16.mxu1 %v2370_v5  ;;  %s2307_s13 = sshll.u32 %s2946_s23, 7  ;;  %v2392_v23 = vld [vmem:[%s2670_s7 + $0x80] ss:$8 sps:$4 sm:$0xff]   ;;  %v2397_v24 = vld [vmem:[%s2670_s7 + $0x94] ss:$8 sps:$4 sm:$0xff]   ;;  %s2304_s17 = sshll.u32 %s2946_s23, 3 }
  0x18   : > { %s2711_s16 = scalar_lea.vmem %s2943_s5, %s2307_s13  ;;  %v2395_v25 = vld [vmem:[%s2670_s7 + $0x90] ss:$8 sps:$4 sm:$0xff]   ;;  %v2400_v26 = vld [vmem:[%s2670_s7 + $0xa4] ss:$8 sps:$4 sm:$0xff]   ;;  %v2398_v27 = vld [vmem:[%s2670_s7 + $0xa0] ss:$8 sps:$4 sm:$0xff]   ;;  %s2761_s20 = scalar_lea.vmem %s2940_s2, %s2304_s17 }
  0x19   : > { %2034 = vmatmul.mubr.msk.bf16.vlgmr.msra.gmra.mrb[0].mxu1 %vm401_vm0, %v2679_v6  ;;  %v2403_v28 = vld [vmem:[%s2670_s7 + $0xb4] ss:$8 sps:$4 sm:$0xff]   ;;  %v2401_v29 = vld [vmem:[%s2670_s7 + $0xb0] ss:$8 sps:$4 sm:$0xff]   ;;  %v2406_v30 = vld [vmem:[%s2670_s7 + $0xc4] ss:$8 sps:$4 sm:$0xff]  }
  0x1a   : > { %661 = vmatpush1.bf16.msra.mxu1 %v2368_v7  ;;  %v2404_v31 = vld [vmem:[%s2670_s7 + $0xc0] ss:$8 sps:$4 sm:$0xff]   ;;  %v2409_v32 = vld [vmem:[%s2670_s7 + $0xd4] ss:$8 sps:$4 sm:$0xff]   ;;  %v2407_v33 = vld [vmem:[%s2670_s7 + $0xd0] ss:$8 sps:$4 sm:$0xff]  }
  0x1b   : > { %662 = vmatprep.subr.bf16.mxu1 %v2373_v8  ;;  %v2412_v34 = vld [vmem:[%s2670_s7 + $0xe4] ss:$8 sps:$4 sm:$0xff]   ;;  %v2410_v35 = vld [vmem:[%s2670_s7 + $0xe0] ss:$8 sps:$4 sm:$0xff]   ;;  %v2415_v36 = vld [vmem:[%s2670_s7 + $0xf4] ss:$8 sps:$4 sm:$0xff]  }
  0x1c   : > { %v2413_v37 = vld [vmem:[%s2670_s7 + $0xf0] ss:$8 sps:$4 sm:$0xff]   ;;  %v2416_v38 = vld [vmem:[%s2697_s12 + $0x4] ss:$8 sps:$4 sm:$0xff]   ;;  %v2418_v39 = vld [vmem:[%s2697_s12] ss:$8 sps:$4 sm:$0xff]  }
  0x1d   : > { %v2419_v40 = vld [vmem:[%s2697_s12 + $0x14] ss:$8 sps:$4 sm:$0xff]   ;;  %915 = vmatprep.subr.bf16.mxu0 %v2416_v38  ;;  %v2421_v41 = vld [vmem:[%s2697_s12 + $0x10] ss:$8 sps:$4 sm:$0xff]   ;;  %v2422_v42 = vld [vmem:[%s2697_s12 + $0x24] ss:$8 sps:$4 sm:$0xff]  }
  0x1e   : > { %663 = vmatpush1.bf16.msra.mxu1 %v2371_v9  ;;  %916 = vmatpush1.bf16.msra.mxu0 %v2418_v39  ;;  %v2424_v43 = vld [vmem:[%s2697_s12 + $0x20] ss:$8 sps:$4 sm:$0xff]   ;;  %v2425_v44 = vld [vmem:[%s2697_s12 + $0x34] ss:$8 sps:$4 sm:$0xff]   ;;  %v2427_v45 = vld [vmem:[%s2697_s12 + $0x30] ss:$8 sps:$4 sm:$0xff]  }
  0x1f   : > { %664 = vmatprep.subr.bf16.mxu1 %v2376_v10  ;;  %917 = vmatprep.subr.bf16.mxu0 %v2419_v40  ;;  %v2428_v46 = vld [vmem:[%s2697_s12 + $0x44] ss:$8 sps:$4 sm:$0xff]   ;;  %v2430_v47 = vld [vmem:[%s2697_s12 + $0x40] ss:$8 sps:$4 sm:$0xff]   ;;  %v2431_v48 = vld [vmem:[%s2697_s12 + $0x54] ss:$8 sps:$4 sm:$0xff]  }
  0x20   : > { %v2433_v49 = vld [vmem:[%s2697_s12 + $0x50] ss:$8 sps:$4 sm:$0xff]   ;;  %v2434_v50 = vld [vmem:[%s2697_s12 + $0x64] ss:$8 sps:$4 sm:$0xff]   ;;  %v2436_v51 = vld [vmem:[%s2697_s12 + $0x60] ss:$8 sps:$4 sm:$0xff]  }
  0x21   : > { %v2437_v52 = vld [vmem:[%s2697_s12 + $0x74] ss:$8 sps:$4 sm:$0xff]   ;;  %v2439_v53 = vld [vmem:[%s2697_s12 + $0x70] ss:$8 sps:$4 sm:$0xff]   ;;  %v2440_v54 = vld [vmem:[%s2697_s12 + $0x84] ss:$8 sps:$4 sm:$0xff]  }
  0x22   : > { %665 = vmatpush1.bf16.msra.mxu1 %v2374_v11  ;;  %918 = vmatpush1.bf16.msra.mxu0 %v2421_v41  ;;  %v2442_v55 = vld [vmem:[%s2697_s12 + $0x80] ss:$8 sps:$4 sm:$0xff]   ;;  %v2443_v56 = vld [vmem:[%s2697_s12 + $0x94] ss:$8 sps:$4 sm:$0xff]   ;;  %v2445_v57 = vld [vmem:[%s2697_s12 + $0x90] ss:$8 sps:$4 sm:$0xff]  }
  0x23   : > { %666 = vmatprep.subr.bf16.mxu1 %v2379_v12  ;;  %919 = vmatprep.subr.bf16.mxu0 %v2422_v42  ;;  %v2446_v58 = vld [vmem:[%s2697_s12 + $0xa4] ss:$8 sps:$4 sm:$0xff]   ;;  %v2448_v59 = vld [vmem:[%s2697_s12 + $0xa0] ss:$8 sps:$4 sm:$0xff]   ;;  %v2449_v60 = vld [vmem:[%s2697_s12 + $0xb4] ss:$8 sps:$4 sm:$0xff]  }
  0x24   : > { %v2451_v61 = vld [vmem:[%s2697_s12 + $0xb0] ss:$8 sps:$4 sm:$0xff]   ;;  %v2452_v62 = vld [vmem:[%s2697_s12 + $0xc4] ss:$8 sps:$4 sm:$0xff]   ;;  %v2454_v63 = vld [vmem:[%s2697_s12 + $0xc0] ss:$8 sps:$4 sm:$0xff]  }
  0x25   : > { %v2455_v1 = vld [vmem:[%s2697_s12 + $0xd4] ss:$8 sps:$4 sm:$0xff]   ;;  %v2457_v2 = vld [vmem:[%s2697_s12 + $0xd0] ss:$8 sps:$4 sm:$0xff]   ;;  %v2756_v4 = vshrl.u32 %v363_v3, 7  ;;  %v2513_v38 = vld [vmem:[%s2711_s16 + $0x68] sm:$0xff]  }
  0x26   : > { %667 = vmatpush1.bf16.msra.mxu1 %v2377_v13  ;;  %920 = vmatpush1.bf16.msra.mxu0 %v2424_v43  ;;  %v2767_v7 = vld [vmem:[%s2761_s20] sm:$0x77]  ;;  %v2517_v39 = vld [vmem:[%s2711_s16 + $0x28] sm:$0xff]   ;;  %s2607_s23 = smov 2   ;;  %s2029_s24 = sshll.u32 %s2948_s22, 1 }
  0x27   : > { %668 = vmatprep.subr.bf16.mxu1 %v2382_v14  ;;  %921 = vmatprep.subr.bf16.mxu0 %v2425_v44  ;;  %v2764_v5 = vsub.s32 0, %v2756_v4  ;;  %v369_v8 = vsub.s32 4, %v2756_v4  ;;  %v2795_v40 = vsub.s32 1, %v2756_v4  ;;  %v488_v41 = vsub.s32 5, %v2756_v4  ;;  %v2484_v3 = vld [vmem:[%s2670_s7 + $0x144] ss:$8 sps:$4 sm:$0xff]   ;;  %s354_s27 = scalar_lea.vmem %s2944_s6, %s2029_s24 }
  0x29   : > { %v366_v9 = vrot.slane %v2767_v7, %v2764_v5  ;;  %v370_v10 = vrot.slane %v2767_v7, %v369_v8  ;;  %v485_v42 = vrot.slane %v2767_v7, %v2795_v40  ;;  %v489_v43 = vrot.slane %v2767_v7, %v488_v41 }
  0x2a   : > { %669 = vmatpush1.bf16.msra.mxu1 %v2380_v15  ;;  %922 = vmatpush1.bf16.msra.mxu0 %v2427_v45 }
  0x2b   : > { %670 = vmatprep.subr.bf16.mxu1 %v2385_v16  ;;  %923 = vmatprep.subr.bf16.mxu0 %v2428_v46  ;;  %v376_v11 = vrot.slane %v366_v9, %v2764_v5  ;;  %v380_v12 = vrot.slane %v370_v10, %v2764_v5  ;;  %v495_v44 = vrot.slane %v485_v42, %v2795_v40  ;;  %v2487_v9 = vld [vmem:[%s2670_s7 + $0x154] ss:$8 sps:$4 sm:$0xff]   ;;  %v2485_v10 = vld [vmem:[%s2670_s7 + $0x150] ss:$8 sps:$4 sm:$0xff]  }
  0x2c   : > { %v499_v45 = vrot.slane %v489_v43, %v2795_v40 }
  0x2e   : > { %671 = vmatpush1.bf16.msra.mxu1 %v2383_v17  ;;  %924 = vmatpush1.bf16.msra.mxu0 %v2430_v47 }
  0x2f   : > { %672 = vmatprep.subr.bf16.mxu1 %v2388_v18  ;;  %925 = vmatprep.subr.bf16.mxu0 %v2431_v48 }
  0x32   : > { %673 = vmatpush1.bf16.msra.mxu1 %v2386_v19  ;;  %926 = vmatpush1.bf16.msra.mxu0 %v2433_v49 }
  0x33   : > { %674 = vmatprep.subr.bf16.mxu1 %v2391_v20  ;;  %927 = vmatprep.subr.bf16.mxu0 %v2434_v50 }
  0x36   : > { %675 = vmatpush1.bf16.msra.mxu1 %v2389_v21  ;;  %928 = vmatpush1.bf16.msra.mxu0 %v2436_v51 }
  0x37   : > { %676 = vmatprep.subr.bf16.mxu1 %v2394_v22  ;;  %929 = vmatprep.subr.bf16.mxu0 %v2437_v52 }
  0x3a   : > { %677 = vmatpush1.bf16.msra.mxu1 %v2392_v23  ;;  %930 = vmatpush1.bf16.msra.mxu0 %v2439_v53  ;;  %v2458_v23 = vld [vmem:[%s2697_s12 + $0xe4] ss:$8 sps:$4 sm:$0xff]  }
  0x3b   : > { %678 = vmatprep.subr.bf16.mxu1 %v2397_v24  ;;  %931 = vmatprep.subr.bf16.mxu0 %v2440_v54  ;;  %v2460_v24 = vld [vmem:[%s2697_s12 + $0xe0] ss:$8 sps:$4 sm:$0xff]  }
  0x3e   : > { %679 = vmatpush1.bf16.msra.mxu1 %v2395_v25  ;;  %932 = vmatpush1.bf16.msra.mxu0 %v2442_v55  ;;  %v2461_v25 = vld [vmem:[%s2697_s12 + $0xf4] ss:$8 sps:$4 sm:$0xff]   ;;  %v2464_v55 = vld [vmem:[%s2662_s28 + $0x20] ss:$8 sps:$4 sm:$0xff]  }
  0x3f   : > { %680 = vmatprep.subr.bf16.mxu1 %v2400_v26  ;;  %933 = vmatprep.subr.bf16.mxu0 %v2443_v56  ;;  %v2463_v26 = vld [vmem:[%s2697_s12 + $0xf0] ss:$8 sps:$4 sm:$0xff]  }
  0x42   : > { %681 = vmatpush1.bf16.msra.mxu1 %v2398_v27  ;;  %934 = vmatpush1.bf16.msra.mxu0 %v2445_v57  ;;  %v2466_v27 = vld [vmem:[%s2662_s28 + $0x24] ss:$8 sps:$4 sm:$0xff]   ;;  %v2469_v57 = vld [vmem:[%s2662_s28 + $0x34] ss:$8 sps:$4 sm:$0xff]  }
  0x43   : > { %682 = vmatprep.subr.bf16.mxu1 %v2403_v28  ;;  %935 = vmatprep.subr.bf16.mxu0 %v2446_v58  ;;  %v2488_v28 = vld [vmem:[%s2711_s16 + $0x40] sm:$0xff]   ;;  %v2467_v58 = vld [vmem:[%s2662_s28 + $0x30] ss:$8 sps:$4 sm:$0xff]  }
  0x46   : > { %683 = vmatpush1.bf16.msra.mxu1 %v2401_v29  ;;  %936 = vmatpush1.bf16.msra.mxu0 %v2448_v59  ;;  %v2492_v29 = vld [vmem:[%s2711_s16] sm:$0xff]  }
  0x47   : > { %684 = vmatprep.subr.bf16.mxu1 %v2406_v30  ;;  %937 = vmatprep.subr.bf16.mxu0 %v2449_v60  ;;  %v2493_v30 = vld [vmem:[%s2711_s16 + $0x48] sm:$0xff]  }
  0x48   : > { %v2472_v59 = vld [vmem:[%s2670_s7 + $0x104] ss:$8 sps:$4 sm:$0xff]   ;;  %v2470_v60 = vld [vmem:[%s2670_s7 + $0x100] ss:$8 sps:$4 sm:$0xff]  }
  0x4a   : > { %685 = vmatpush1.bf16.msra.mxu1 %v2404_v31  ;;  %938 = vmatpush1.bf16.msra.mxu0 %v2451_v61  ;;  %v2497_v31 = vld [vmem:[%s2711_s16 + $0x8] sm:$0xff]   ;;  %v2475_v61 = vld [vmem:[%s2670_s7 + $0x114] ss:$8 sps:$4 sm:$0xff]  }
  0x4b   : > { %686 = vmatprep.subr.bf16.mxu1 %v2409_v32  ;;  %939 = vmatprep.subr.bf16.mxu0 %v2452_v62  ;;  %v2498_v32 = vld [vmem:[%s2711_s16 + $0x50] sm:$0xff]  }
  0x4c   : > { %v2473_v62 = vld [vmem:[%s2670_s7 + $0x110] ss:$8 sps:$4 sm:$0xff]  }
  0x4e   : > { %687 = vmatpush1.bf16.msra.mxu1 %v2407_v33  ;;  %940 = vmatpush1.bf16.msra.mxu0 %v2454_v63  ;;  %v2502_v33 = vld [vmem:[%s2711_s16 + $0x10] sm:$0xff]   ;;  %v2478_v63 = vld [vmem:[%s2670_s7 + $0x124] ss:$8 sps:$4 sm:$0xff]  }
  0x4f   : > { %688 = vmatprep.subr.bf16.mxu1 %v2412_v34  ;;  %941 = vmatprep.subr.bf16.mxu0 %v2455_v1  ;;  %v2503_v34 = vld [vmem:[%s2711_s16 + $0x58] sm:$0xff]  }
  0x50   : > { %v2481_v1 = vld [vmem:[%s2670_s7 + $0x134] ss:$8 sps:$4 sm:$0xff]  }
  0x52   : > { %689 = vmatpush1.bf16.msra.mxu1 %v2410_v35  ;;  %942 = vmatpush1.bf16.msra.mxu0 %v2457_v2  ;;  %v2507_v35 = vld [vmem:[%s2711_s16 + $0x18] sm:$0xff]  }
  0x53   : > { %690 = vmatprep.subr.bf16.mxu1 %v2415_v36  ;;  %943 = vmatprep.subr.bf16.mxu0 %v2458_v23  ;;  %v2508_v36 = vld [vmem:[%s2711_s16 + $0x60] sm:$0xff]   ;;  %v2479_v2 = vld [vmem:[%s2670_s7 + $0x130] ss:$8 sps:$4 sm:$0xff]  }
  0x54   : > { %v2518_v23 = vld [vmem:[%s2711_s16 + $0x70] sm:$0xff]  }
  0x56   : > { %691 = vmatpush1.bf16.msra.mxu1 %v2413_v37  ;;  %944 = vmatpush1.bf16.msra.mxu0 %v2460_v24  ;;  %v2512_v37 = vld [vmem:[%s2711_s16 + $0x20] sm:$0xff]  }
  0x57   : > { %945 = vmatprep.subr.bf16.mxu0 %v2461_v25  ;;  %2308 = vmatprep.subr.bf16.mxu1 %v2488_v28  ;;  %v2521_v24 = vld [vmem:[%s2670_s7 + $0x1c4] ss:$8 sps:$4 sm:$0xff]   ;;  %v2519_v25 = vld [vmem:[%s2670_s7 + $0x1c0] ss:$8 sps:$4 sm:$0xff]   ;;  %v2526_v28 = vld [vmem:[%s2670_s7 + $0x1d4] ss:$8 sps:$4 sm:$0xff]  }
  0x5a   : > { %946 = vmatpush1.bf16.msra.mxu0 %v2463_v26  ;;  %v2522_v26 = vld [vmem:[%s2711_s16 + $0x30] sm:$0xff]  }
  0x5b   : > { %1174 = vmatprep.subr.bf16.mxu0 %v2466_v27  ;;  %v2523_v27 = vld [vmem:[%s2711_s16 + $0x78] sm:$0xff]  }
  0xec   : > { %v439_v13 = vpop.f32.mrb[0].mxu1 }
  0xed   : > { %v440_v14 = vadd.f32 %v439_v13, %v376_v11  ;;  %v441_v15 = vpop.f32.mrb[1].mxu1  ;;  %v2491_v11 = vld [vmem:[%s2670_s7 + $0x164] ss:$8 sps:$4 sm:$0xff]   ;;  %v2496_v13 = vld [vmem:[%s2670_s7 + $0x174] ss:$8 sps:$4 sm:$0xff]  }
  0xee   : > { %v442_v16 = vadd.f32 %v441_v15, %v380_v12  ;;  %v443_v17 = vpop.f32.mrb[2].mxu1  ;;  %v2489_v12 = vld [vmem:[%s2670_s7 + $0x160] ss:$8 sps:$4 sm:$0xff]   ;;  %v2501_v15 = vld [vmem:[%s2670_s7 + $0x184] ss:$8 sps:$4 sm:$0xff]  }
  0xef   : > { %v446_v18 = vmax.f32 %v440_v14, 0.0  ;;  %v444_v19 = vpop.f32.mrb[3].mxu1  ;;  %v2494_v14 = vld [vmem:[%s2670_s7 + $0x170] ss:$8 sps:$4 sm:$0xff]   ;;  %v2506_v17 = vld [vmem:[%s2670_s7 + $0x194] ss:$8 sps:$4 sm:$0xff]  }
  0xf0   : > { %v447_v20 = vmax.f32 %v442_v16, 0.0  ;;  %v2499_v16 = vld [vmem:[%s2670_s7 + $0x180] ss:$8 sps:$4 sm:$0xff]   ;;  %v2511_v19 = vld [vmem:[%s2670_s7 + $0x1a4] ss:$8 sps:$4 sm:$0xff]  }
  0xf1   : > { %v448_v22 = vpack.c.bf16 %v446_v18, %v446_v18  ;;  %v2504_v18 = vld [vmem:[%s2670_s7 + $0x190] ss:$8 sps:$4 sm:$0xff]  }
  0xf2   : > { %v449_v21 = vpack.c.bf16 %v447_v20, %v447_v20  ;;  %v2509_v20 = vld [vmem:[%s2670_s7 + $0x1a0] ss:$8 sps:$4 sm:$0xff]  }
  0xf4   : > { %692 = vmatprep.mubr.bf16.mxu1 %v449_v21  ;;  %v2516_v21 = vld [vmem:[%s2670_s7 + $0x1b4] ss:$8 sps:$4 sm:$0xff]  }
  0xf5   : > { %693 = vmatmul.mubr.bf16.vlgmr.msra.gmra.mrb[4].mxu1 %v448_v22  ;;  %v2514_v22 = vld [vmem:[%s2670_s7 + $0x1b0] ss:$8 sps:$4 sm:$0xff]  }
  0xf6   : > { %2309 = vmatpush3.bf16.msra.mxu1 %v2492_v29  ;;  %v2524_v29 = vld [vmem:[%s2670_s7 + $0x1d0] ss:$8 sps:$4 sm:$0xff]  }
  0xf7   : > { %2310 = vmatprep.subr.bf16.mxu1 %v2493_v30  ;;  %v2527_v30 = vld [vmem:[%s2711_s16 + $0x38] sm:$0xff]  }
  0xfa   : > { %2311 = vmatpush3.bf16.msra.mxu1 %v2497_v31  ;;  %v2530_v31 = vld [vmem:[%s2670_s7 + $0x1e4] ss:$8 sps:$4 sm:$0xff]  }
  0xfb   : > { %2312 = vmatprep.subr.bf16.mxu1 %v2498_v32  ;;  %v2528_v32 = vld [vmem:[%s2670_s7 + $0x1e0] ss:$8 sps:$4 sm:$0xff]  }
  0xfe   : > { %2313 = vmatpush3.bf16.msra.mxu1 %v2502_v33  ;;  %v2533_v33 = vld [vmem:[%s2670_s7 + $0x1f4] ss:$8 sps:$4 sm:$0xff]  }
  0xff   : > { %2314 = vmatprep.subr.bf16.mxu1 %v2503_v34  ;;  %v2531_v34 = vld [vmem:[%s2670_s7 + $0x1f0] ss:$8 sps:$4 sm:$0xff]  }
 0x102   : > { %2315 = vmatpush3.bf16.msra.mxu1 %v2507_v35  ;;  %v2536_v35 = vld [vmem:[%s2697_s12 + $0x104] ss:$8 sps:$4 sm:$0xff]  }
 0x103   : > { %2316 = vmatprep.subr.bf16.mxu1 %v2508_v36  ;;  %v2849_v36 = vsub.s32 2, %v2756_v4 }
 0x106   : > { %2317 = vmatpush3.bf16.msra.mxu1 %v2512_v37  ;;  %v743_v37 = vsub.s32 6, %v2756_v4 }
 0x107   : > { %2318 = vmatprep.subr.bf16.mxu1 %v2513_v38  ;;  %v740_v38 = vrot.slane %v2767_v7, %v2849_v36 }
 0x109   : > { %v750_v42 = vrot.slane %v740_v38, %v2849_v36  ;;  %v2579_v38 = vld [vmem:[%s2697_s12 + $0x1f0] ss:$8 sps:$4 sm:$0xff]  }
 0x10a   : > { %2319 = vmatpush3.bf16.msra.mxu1 %v2517_v39  ;;  %v744_v39 = vrot.slane %v2767_v7, %v743_v37 }
 0x10b   : > { %2320 = vmatprep.subr.bf16.mxu1 %v2518_v23  ;;  %v2563_v23 = vld [vmem:[%s2697_s12 + $0x194] ss:$8 sps:$4 sm:$0xff]  }
 0x10c   : > { %v754_v43 = vrot.slane %v744_v39, %v2849_v36  ;;  %v2582_v39 = vld [vmem:[%s2711_s16 + $0xc0] sm:$0xff]  }
 0x10e   : > { %2321 = vmatpush3.bf16.msra.mxu1 %v2522_v26  ;;  %v2564_v26 = vld [vmem:[%s2697_s12 + $0x1a0] ss:$8 sps:$4 sm:$0xff]  }
 0x10f   : > { %2322 = vmatprep.subr.bf16.mxu1 %v2523_v27  ;;  %v2569_v27 = vld [vmem:[%s2697_s12 + $0x1b4] ss:$8 sps:$4 sm:$0xff]  }
 0x112   : > { %2323 = vmatpush3.bf16.msra.mxu1 %v2527_v30  ;;  %v2570_v30 = vld [vmem:[%s2697_s12 + $0x1c0] ss:$8 sps:$4 sm:$0xff]  }
 0x113   : > { %1686 = vmatprep.subr.bf16.mxu1 %v2536_v35  ;;  %v2581_v35 = vld [vmem:[%s2697_s12 + $0x1f4] ss:$8 sps:$4 sm:$0xff]  }
 0x1c8   : > { %v694_v46 = vpop.f32.mrb[4].mxu1 }
 0x1c9   : > { %v695_v47 = vadd.f32 %v694_v46, %v495_v44  ;;  %v696_v48 = vpop.f32.mrb[5].mxu1  ;;  %v2860_v44 = vld [vmem:[%s2761_s20 + $0x8] sm:$0x77] }
 0x1ca   : > { %v697_v49 = vadd.f32 %v696_v48, %v499_v45  ;;  %v698_v50 = vpop.f32.mrb[6].mxu1  ;;  %v1139_v48 = vrot.slane %v2860_v44, %v2764_v5  ;;  %v1143_v7 = vrot.slane %v2860_v44, %v369_v8 }
 0x1cb   : > { %v701_v51 = vmax.f32 %v695_v47, 0.0  ;;  %v699_v52 = vpop.f32.mrb[7].mxu1 }
 0x1cc   : > { %v702_v53 = vmax.f32 %v697_v49, 0.0 }
 0x1cd   : > { %v703_v56 = vpack.c.bf16 %v701_v51, %v701_v51 }
 0x1ce   : > { %v704_v54 = vpack.c.bf16 %v702_v53, %v702_v53 }
 0x1d0   : > { %947 = vmatprep.mubr.bf16.mxu0 %v704_v54  ;;  %v1149_v54 = vrot.slane %v1139_v48, %v2764_v5  ;;  %v2588_v48 = vld [vmem:[%s2711_s16 + $0xd8] sm:$0xff]  }
 0x1d1   : > { %948 = vmatmul.mubr.bf16.vlgmr.msra.gmra.mrb[0].mxu0 %v703_v56  ;;  %v1153_v56 = vrot.slane %v1143_v7, %v2764_v5  ;;  %v2542_v5 = vld [vmem:[%s2697_s12 + $0x124] ss:$8 sps:$4 sm:$0xff]  }
 0x1d2   : > { %1175 = vmatpush1.bf16.msra.mxu0 %v2464_v55  ;;  %1206 = vmatprep.mubr.bf16.mxu0 %v2606_v0  ;;  %v2476_v0 = vld [vmem:[%s2670_s7 + $0x120] ss:$8 sps:$4 sm:$0xff]  }
 0x1d3   : > { %1176 = vmatprep.subr.bf16.mxu0 %v2469_v57  ;;  %v2534_v57 = vld [vmem:[%s2697_s12 + $0x100] ss:$8 sps:$4 sm:$0xff]  }
 0x1d4   : > { %v2591_v7 = vld [vmem:[%s2711_s16 + $0xa0] sm:$0xff]  }
 0x1d6   : > { %1177 = vmatpush1.bf16.msra.mxu0 %v2467_v58 }
 0x1d7   : > { %1430 = vmatprep.subr.bf16.mxu0 %v2472_v59  ;;  %v2539_v59 = vld [vmem:[%s2697_s12 + $0x114] ss:$8 sps:$4 sm:$0xff]  }
 0x1d9   : > { %2124 = vmatmul.mubr.msk.bf16.vlgmr.msra.gmra.mrb[4].mxu0 %vm401_vm0, %v2679_v6  ;;  %v2482_v6 = vld [vmem:[%s2670_s7 + $0x140] ss:$8 sps:$4 sm:$0xff]  }
 0x1da   : > { %1431 = vmatpush1.bf16.msra.mxu0 %v2470_v60 }
 0x1db   : > { %1432 = vmatprep.subr.bf16.mxu0 %v2475_v61 }
 0x1de   : > { %1433 = vmatpush1.bf16.msra.mxu0 %v2473_v62 }
 0x1df   : > { %1434 = vmatprep.subr.bf16.mxu0 %v2478_v63 }
 0x1e2   : > { %1435 = vmatpush1.bf16.msra.mxu0 %v2476_v0  ;;  %v2537_v0 = vld [vmem:[%s2697_s12 + $0x110] ss:$8 sps:$4 sm:$0xff]  }
 0x1e3   : > { %1436 = vmatprep.subr.bf16.mxu0 %v2481_v1 }
 0x1e6   : > { %1437 = vmatpush1.bf16.msra.mxu0 %v2479_v2 }
 0x1e7   : > { %1438 = vmatprep.subr.bf16.mxu0 %v2484_v3 }
 0x1ea   : > { %1439 = vmatpush1.bf16.msra.mxu0 %v2482_v6 }
 0x1eb   : > { %1440 = vmatprep.subr.bf16.mxu0 %v2487_v9  ;;  %v2540_v9 = vld [vmem:[%s2697_s12 + $0x120] ss:$8 sps:$4 sm:$0xff]  }
 0x1ee   : > { %1441 = vmatpush1.bf16.msra.mxu0 %v2485_v10 }
 0x1ef   : > { %1442 = vmatprep.subr.bf16.mxu0 %v2491_v11  ;;  %v2545_v11 = vld [vmem:[%s2697_s12 + $0x134] ss:$8 sps:$4 sm:$0xff]  }
 0x1f2   : > { %1443 = vmatpush1.bf16.msra.mxu0 %v2489_v12  ;;  %v2543_v12 = vld [vmem:[%s2697_s12 + $0x130] ss:$8 sps:$4 sm:$0xff]  }
 0x1f3   : > { %1444 = vmatprep.subr.bf16.mxu0 %v2496_v13  ;;  %v2548_v13 = vld [vmem:[%s2697_s12 + $0x144] ss:$8 sps:$4 sm:$0xff]  }
 0x1f6   : > { %1445 = vmatpush1.bf16.msra.mxu0 %v2494_v14  ;;  %v2546_v14 = vld [vmem:[%s2697_s12 + $0x140] ss:$8 sps:$4 sm:$0xff]  }
 0x1f7   : > { %1446 = vmatprep.subr.bf16.mxu0 %v2501_v15  ;;  %v2551_v15 = vld [vmem:[%s2697_s12 + $0x154] ss:$8 sps:$4 sm:$0xff]  }
 0x1fa   : > { %1447 = vmatpush1.bf16.msra.mxu0 %v2499_v16  ;;  %v2549_v16 = vld [vmem:[%s2697_s12 + $0x150] ss:$8 sps:$4 sm:$0xff]  }
 0x1fb   : > { %1448 = vmatprep.subr.bf16.mxu0 %v2506_v17  ;;  %v2554_v17 = vld [vmem:[%s2697_s12 + $0x164] ss:$8 sps:$4 sm:$0xff]  }
 0x1fe   : > { %1449 = vmatpush1.bf16.msra.mxu0 %v2504_v18  ;;  %v2552_v18 = vld [vmem:[%s2697_s12 + $0x160] ss:$8 sps:$4 sm:$0xff]  }
 0x1ff   : > { %1450 = vmatprep.subr.bf16.mxu0 %v2511_v19  ;;  %v2557_v19 = vld [vmem:[%s2697_s12 + $0x174] ss:$8 sps:$4 sm:$0xff]  }
 0x202   : > { %1451 = vmatpush1.bf16.msra.mxu0 %v2509_v20  ;;  %v2555_v20 = vld [vmem:[%s2697_s12 + $0x170] ss:$8 sps:$4 sm:$0xff]  }
 0x203   : > { %1452 = vmatprep.subr.bf16.mxu0 %v2516_v21  ;;  %v2560_v21 = vld [vmem:[%s2697_s12 + $0x184] ss:$8 sps:$4 sm:$0xff]  }
 0x206   : > { %1453 = vmatpush1.bf16.msra.mxu0 %v2514_v22  ;;  %v2558_v22 = vld [vmem:[%s2697_s12 + $0x180] ss:$8 sps:$4 sm:$0xff]  }
 0x207   : > { %1454 = vmatprep.subr.bf16.mxu0 %v2521_v24  ;;  %v2561_v24 = vld [vmem:[%s2697_s12 + $0x190] ss:$8 sps:$4 sm:$0xff]  }
 0x20a   : > { %1455 = vmatpush1.bf16.msra.mxu0 %v2519_v25  ;;  %v2566_v25 = vld [vmem:[%s2697_s12 + $0x1a4] ss:$8 sps:$4 sm:$0xff]  }
 0x20b   : > { %1456 = vmatprep.subr.bf16.mxu0 %v2526_v28  ;;  %v2567_v28 = vld [vmem:[%s2697_s12 + $0x1b0] ss:$8 sps:$4 sm:$0xff]  }
 0x20e   : > { %1457 = vmatpush1.bf16.msra.mxu0 %v2524_v29  ;;  %v2572_v29 = vld [vmem:[%s2697_s12 + $0x1c4] ss:$8 sps:$4 sm:$0xff]  }
 0x20f   : > { %1458 = vmatprep.subr.bf16.mxu0 %v2530_v31  ;;  %v2573_v31 = vld [vmem:[%s2697_s12 + $0x1d0] ss:$8 sps:$4 sm:$0xff]  }
 0x212   : > { %1459 = vmatpush1.bf16.msra.mxu0 %v2528_v32  ;;  %v2575_v32 = vld [vmem:[%s2697_s12 + $0x1d4] ss:$8 sps:$4 sm:$0xff]  }
 0x213   : > { %1460 = vmatprep.subr.bf16.mxu0 %v2533_v33  ;;  %v2578_v33 = vld [vmem:[%s2697_s12 + $0x1e4] ss:$8 sps:$4 sm:$0xff]  }
 0x216   : > { %1461 = vmatpush1.bf16.msra.mxu0 %v2531_v34  ;;  %v2576_v34 = vld [vmem:[%s2697_s12 + $0x1e0] ss:$8 sps:$4 sm:$0xff]  }
 0x217   : > { %2330 = vmatprep.subr.bf16.mxu0 %v2582_v39 }
 0x2a4   : > { %v949_v45 = vpop.f32.mrb[0].mxu0 }
 0x2a5   : > { %v950_v46 = vadd.f32 %v949_v45, %v750_v42  ;;  %v951_v47 = vpop.f32.mrb[1].mxu0  ;;  %v2583_v42 = vld [vmem:[%s2711_s16 + $0x80] sm:$0xff]   ;;  %v2585_v45 = vld [vmem:[%s2711_s16 + $0x88] sm:$0xff]  }
 0x2a6   : > { %v952_v49 = vadd.f32 %v951_v47, %v754_v43  ;;  %v953_v50 = vpop.f32.mrb[2].mxu0  ;;  %v2584_v43 = vld [vmem:[%s2711_s16 + $0xc8] sm:$0xff]   ;;  %v2587_v47 = vld [vmem:[%s2711_s16 + $0x90] sm:$0xff]  }
 0x2a7   : > { %v956_v51 = vmax.f32 %v950_v46, 0.0  ;;  %v954_v52 = vpop.f32.mrb[3].mxu0  ;;  %v2586_v46 = vld [vmem:[%s2711_s16 + $0xd0] sm:$0xff]   ;;  %v2590_v50 = vld [vmem:[%s2711_s16 + $0xe0] sm:$0xff]  }
 0x2a8   : > { %v957_v53 = vmax.f32 %v952_v49, 0.0  ;;  %v2589_v49 = vld [vmem:[%s2711_s16 + $0x98] sm:$0xff]   ;;  %v2593_v52 = vld [vmem:[%s2711_s16 + $0xa8] sm:$0xff]  }
 0x2a9   : > { %v958_v58 = vpack.c.bf16 %v956_v51, %v956_v51  ;;  %v2592_v51 = vld [vmem:[%s2711_s16 + $0xe8] sm:$0xff]  }
 0x2aa   : > { %v959_v55 = vpack.c.bf16 %v957_v53, %v957_v53 }
 0x2ac   : > { %1120 = vmatprep.mubr.bf16.mxu1 %v959_v55  ;;  %v1208_v60 = vpop.f32.mrb[4].mxu0  ;;  %v1255_v55 = vrot.slane %v2860_v44, %v2795_v40 }
 0x2ad   : > { %v1209_v61 = vadd.f32 %v1208_v60, %v1149_v54  ;;  %1121 = vmatmul.mubr.bf16.vlgmr.msra.gmra.mrb[8].mxu1 %v958_v58  ;;  %v1210_v8 = vpop.f32.mrb[5].mxu0  ;;  %v1259_v58 = vrot.slane %v2860_v44, %v488_v41  ;;  %v2594_v41 = vld [vmem:[%s2711_s16 + $0xf0] sm:$0xff]  }
 0x2ae   : > { %v1211_v62 = vadd.f32 %v1210_v8, %v1153_v56  ;;  %v1212_v63 = vpop.f32.mrb[6].mxu0  ;;  %1687 = vmatpush1.bf16.msra.mxu1 %v2534_v57  ;;  %v1265_v60 = vrot.slane %v1255_v55, %v2795_v40 }
 0x2af   : > { %v1215_v1 = vmax.f32 %v1209_v61, 0.0  ;;  %v1213_v2 = vpop.f32.mrb[7].mxu0  ;;  %1688 = vmatprep.subr.bf16.mxu1 %v2539_v59  ;;  %v1269_v61 = vrot.slane %v1259_v58, %v2795_v40  ;;  %v2597_v40 = vld [vmem:[%s2711_s16 + $0xb8] sm:$0xff]  }
 0x2b0   : > { %v1216_v3 = vmax.f32 %v1211_v62, 0.0 }
 0x2b1   : > { %v1217_v10 = vpack.c.bf16 %v1215_v1, %v1215_v1 }
 0x2b2   : > { %v1218_v6 = vpack.c.bf16 %v1216_v3, %v1216_v3  ;;  %1689 = vmatpush1.bf16.msra.mxu1 %v2537_v0 }
 0x2b3   : > { %1690 = vmatprep.subr.bf16.mxu1 %v2542_v5 }
 0x2b4   : > { %1462 = vmatprep.mubr.bf16.mxu0 %v1218_v6 }
 0x2b5   : > { %1463 = vmatmul.mubr.bf16.vlgmr.msra.gmra.mrb[8].mxu0 %v1217_v10  ;;  %v2595_v10 = vld [vmem:[%s2711_s16 + $0xb0] sm:$0xff]  }
 0x2b6   : > { %1691 = vmatpush1.bf16.msra.mxu1 %v2540_v9  ;;  %2331 = vmatpush3.bf16.msra.mxu0 %v2583_v42 }
 0x2b7   : > { %1692 = vmatprep.subr.bf16.mxu1 %v2545_v11  ;;  %2332 = vmatprep.subr.bf16.mxu0 %v2584_v43  ;;  %v2596_v11 = vld [vmem:[%s2711_s16 + $0xf8] sm:$0xff]  }
 0x2ba   : > { %1693 = vmatpush1.bf16.msra.mxu1 %v2543_v12  ;;  %2333 = vmatpush3.bf16.msra.mxu0 %v2585_v45  ;;  %v1511_v12 = vrot.slane %v2860_v44, %v2849_v36 }
 0x2bb   : > { %1694 = vmatprep.subr.bf16.mxu1 %v2548_v13  ;;  %2334 = vmatprep.subr.bf16.mxu0 %v2586_v46  ;;  %v1515_v13 = vrot.slane %v2860_v44, %v743_v37 }
 0x2be   : > { %1695 = vmatpush1.bf16.msra.mxu1 %v2546_v14  ;;  %2335 = vmatpush3.bf16.msra.mxu0 %v2587_v47  ;;  %v1521_v14 = vrot.slane %v1511_v12, %v2849_v36 }
 0x2bf   : > { %1696 = vmatprep.subr.bf16.mxu1 %v2551_v15  ;;  %2336 = vmatprep.subr.bf16.mxu0 %v2588_v48  ;;  %v1525_v15 = vrot.slane %v1515_v13, %v2849_v36 }
 0x2c2   : > { %1697 = vmatpush1.bf16.msra.mxu1 %v2549_v16  ;;  %2337 = vmatpush3.bf16.msra.mxu0 %v2589_v49 }
 0x2c3   : > { %1698 = vmatprep.subr.bf16.mxu1 %v2554_v17  ;;  %2338 = vmatprep.subr.bf16.mxu0 %v2590_v50 }
 0x2c6   : > { %1699 = vmatpush1.bf16.msra.mxu1 %v2552_v18  ;;  %2339 = vmatpush3.bf16.msra.mxu0 %v2591_v7 }
 0x2c7   : > { %1700 = vmatprep.subr.bf16.mxu1 %v2557_v19  ;;  %2340 = vmatprep.subr.bf16.mxu0 %v2592_v51 }
 0x2ca   : > { %1701 = vmatpush1.bf16.msra.mxu1 %v2555_v20  ;;  %2341 = vmatpush3.bf16.msra.mxu0 %v2593_v52 }
 0x2cb   : > { %1702 = vmatprep.subr.bf16.mxu1 %v2560_v21  ;;  %2342 = vmatprep.subr.bf16.mxu0 %v2594_v41 }
 0x2ce   : > { %1703 = vmatpush1.bf16.msra.mxu1 %v2558_v22  ;;  %2343 = vmatpush3.bf16.msra.mxu0 %v2595_v10 }
 0x2cf   : > { %1704 = vmatprep.subr.bf16.mxu1 %v2563_v23  ;;  %2344 = vmatprep.subr.bf16.mxu0 %v2596_v11 }
 0x2d2   : > { %1705 = vmatpush1.bf16.msra.mxu1 %v2561_v24  ;;  %2345 = vmatpush3.bf16.msra.mxu0 %v2597_v40 }
 0x2d3   : > { %1706 = vmatprep.subr.bf16.mxu1 %v2566_v25 }
 0x2d6   : > { %1707 = vmatpush1.bf16.msra.mxu1 %v2564_v26 }
 0x2d7   : > { %1708 = vmatprep.subr.bf16.mxu1 %v2569_v27 }
 0x2da   : > { %1709 = vmatpush1.bf16.msra.mxu1 %v2567_v28 }
 0x2db   : > { %1710 = vmatprep.subr.bf16.mxu1 %v2572_v29 }
 0x2de   : > { %1711 = vmatpush1.bf16.msra.mxu1 %v2570_v30 }
 0x2df   : > { %1712 = vmatprep.subr.bf16.mxu1 %v2575_v32 }
 0x2e2   : > { %1713 = vmatpush1.bf16.msra.mxu1 %v2573_v31 }
 0x2e3   : > { %1714 = vmatprep.subr.bf16.mxu1 %v2578_v33 }
 0x2e6   : > { %1715 = vmatpush1.bf16.msra.mxu1 %v2576_v34 }
 0x2e7   : > { %1716 = vmatprep.subr.bf16.mxu1 %v2581_v35 }
 0x2ea   : > { %1717 = vmatpush1.bf16.msra.mxu1 %v2579_v38 }
 0x380   : > { %v2324_v53 = vpop.f32.mrb[8].mxu1 }
 0x381   : > { %v2325_v54 = vpop.f32.mrb[9].mxu1 }
 0x382   : > { %v2326_v56 = vadd.f32 %v2325_v54, %v2324_v53  ;;  %v2327_v57 = vpop.f32.mrb[10].mxu1 }
 0x383   : > { %v2328_v59 = vpop.f32.mrb[11].mxu1 }
 0x388   : > { %v1464_v8 = vpop.f32.mrb[8].mxu0 }
 0x389   : > { %v1465_v62 = vadd.f32 %v1464_v8, %v1265_v60  ;;  %v1466_v63 = vpop.f32.mrb[9].mxu0 }
 0x38a   : > { %v1467_v0 = vadd.f32 %v1466_v63, %v1269_v61  ;;  %v1468_v1 = vpop.f32.mrb[10].mxu0 }
 0x38b   : > { %v1471_v2 = vmax.f32 %v1465_v62, 0.0  ;;  %v1469_v5 = vpop.f32.mrb[11].mxu0 }
 0x38c   : > { %v1472_v3 = vmax.f32 %v1467_v0, 0.0 }
 0x38d   : > { %v1473_v9 = vpack.c.bf16 %v1471_v2, %v1471_v2 }
 0x38e   : > { %v1474_v6 = vpack.c.bf16 %v1472_v3, %v1472_v3 }
 0x390   : > { %1718 = vmatprep.mubr.bf16.mxu1 %v1474_v6 }
 0x391   : > { %1719 = vmatmul.mubr.bf16.vlgmr.msra.gmra.mrb[12].mxu1 %v1473_v9 }
 0x464   : > { %v1720_v16 = vpop.f32.mrb[12].mxu1 }
 0x465   : > { %v1721_v17 = vadd.f32 %v1720_v16, %v1521_v14  ;;  %v1722_v18 = vpop.f32.mrb[13].mxu1 }
 0x466   : > { %v1723_v19 = vadd.f32 %v1722_v18, %v1525_v15  ;;  %v1724_v20 = vpop.f32.mrb[14].mxu1 }
 0x467   : > { %v1727_v21 = vmax.f32 %v1721_v17, 0.0  ;;  %v1725_v22 = vpop.f32.mrb[15].mxu1 }
 0x468   : > { %v1728_v23 = vmax.f32 %v1723_v19, 0.0 }
 0x469   : > { %v1729_v25 = vpack.c.bf16 %v1727_v21, %v1727_v21 }
 0x46a   : > { %v1730_v24 = vpack.c.bf16 %v1728_v23, %v1728_v23 }
 0x46c   : > { %1892 = vmatprep.mubr.bf16.mxu0 %v1730_v24 }
 0x46d   : > { %1893 = vmatmul.mubr.bf16.vlgmr.msra.gmra.mrb[12].mxu0 %v1729_v25 }
 0x540   : > { %v2346_v4 = vpop.f32.mrb[12].mxu0 }
 0x541   : > { %v2347_v37 = vpop.f32.mrb[13].mxu0 }
 0x542   : > { %v2348_v44 = vadd.f32 %v2347_v37, %v2346_v4  ;;  %v2349_v26 = vpop.f32.mrb[14].mxu0 }
 0x543   : > { %v2350_v27 = vpop.f32.mrb[15].mxu0 }
 0x544   : > { %1901 = vrot.lane.b32.xlu0 %v2348_v44, %s2607_s23 }
 0x5b6   : > { %v1902_v36 = vpop.permute.xlu0 %1901 }
 0x5b7   : > { %v1905_v28 = vsel %vm1904_vm1, %v2326_v56, %v1902_v36 }
 0x5b8   : > { %1907 = vst.msk [vmem:[%s354_s27] sm:$0x3] %vm1906_vm2, %v1905_v28 }
 0x5b9 PF: > { %s16_s21 = sadd.s32 1, %s2604_s21  }
 0x5ba   : > { %p13_p5 = scmp.ge.s32.totalorder %s16_s21, 4  }
 0x5bc   :  { %15 = sbr.rel (!%p13_p5) target bundleno = 1 (0x1), region = 91 }

</bundles_post_ra>
